<compile_context>
chip_gen: v7x
topology: tpu7x:2x2x1
jax: 0.10.0
libtpu: 0.0.40
codegen_flags: <defaults>
</compile_context>

<pallas_src>
import jax
import jax.numpy as jnp
from jax.experimental import pallas as pl
from jax.experimental.pallas import tpu as pltpu

_OUT_PAD = 128  # lane-dense classifier output width (real classes = 10)


def _classifier_kernel(x_ref, w_ref, b_ref, logits_ref):
    # x_ref:      (TB, L)   VMEM input tile
    # w_ref:      (L, 128)  VMEM, zero-padded weights (resident across grid)
    # b_ref:      (1, 128)  VMEM, zero-padded bias     (resident across grid)
    # logits_ref: (TB, 128) VMEM output tile (lane-dense, unmasked stores)
    logits_ref[...] = (
        jnp.dot(x_ref[...], w_ref[...], preferred_element_type=jnp.float32)
        + b_ref[...]
    ).astype(logits_ref.dtype)


def _round_up(x: int, m: int) -> int:
    return ((x + m - 1) // m) * m


def _vmem_budget_bytes() -> int:
    """Generation-aware VMEM budget (half of physical capacity, >=16 MiB)."""
    try:
        cap = int(pltpu.get_tpu_info().vmem_capacity_bytes)
    except Exception:
        cap = 64 << 20  # conservative fallback (v7x physical per-TC)
    return max(16 << 20, cap // 2)


def _pick_tile_batch(batch: int, latent: int, x_bytes: int, out_bytes: int,
                     param_bytes: int, sublane: int, vmem_budget: int) -> int:
    """Size the batch tile by streamed bytes per grid step + VMEM budget."""
    per_row_stream = latent * x_bytes + _OUT_PAD * out_bytes
    # Resident (double-buffered) W + b footprint, subtracted from the budget.
    resident = 2 * (latent * _OUT_PAD * param_bytes + _OUT_PAD * param_bytes)
    avail = max(vmem_budget - resident, 1 << 20)
    vmem_cap = avail // (2 * per_row_stream)          # double-buffered x + out
    target_cap = (4 << 20) // per_row_stream          # ~4 MiB streamed per step
    tb = min(vmem_cap, target_cap, 8192)
    tb = min(tb, _round_up(batch, sublane))           # never bigger than batch
    if batch >= 2 * sublane:
        # Keep >=2 grid steps so the "parallel" axis can split across v7x's 2 TCs.
        tb = min(tb, _round_up(pl.cdiv(batch, 2), sublane))
    tb = max(sublane, (tb // sublane) * sublane)
    return int(tb)


def pad_classifier_params(w, b):
    """Zero-pad Linear(latent, 10) params to a lane-dense 128-wide output."""
    latent, n_classes = w.shape
    w_pad = jnp.zeros((latent, _OUT_PAD), w.dtype).at[:, :n_classes].set(w)
    b_pad = jnp.zeros((1, _OUT_PAD), b.dtype).at[0, :n_classes].set(b)
    return w_pad, b_pad


def _classifier_pallas(x, w_pad, b_pad, *, tile_batch=None, out_dtype=None):
    batch, latent = x.shape
    out_dtype = x.dtype if out_dtype is None else jnp.dtype(out_dtype)
    x_bytes = jnp.dtype(x.dtype).itemsize
    out_bytes = jnp.dtype(out_dtype).itemsize
    param_bytes = jnp.dtype(w_pad.dtype).itemsize
    # Sublane multiple: 8 for 32-bit tiles, 16 if any streamed array is 16-bit.
    sublane = 16 if min(x_bytes, out_bytes) == 2 else 8

    vmem_budget = _vmem_budget_bytes()
    if tile_batch is None:
        tile_batch = _pick_tile_batch(batch, latent, x_bytes, out_bytes,
                                      param_bytes, sublane, vmem_budget)
    else:
        tile_batch = max(sublane, (int(tile_batch) // sublane) * sublane)

    # No jnp.pad of x: ragged last block is handled by Pallas (OOB writes dropped).
    num_tiles = pl.cdiv(batch, tile_batch)

    logits_pad = pl.pallas_call(
        _classifier_kernel,
        out_shape=jax.ShapeDtypeStruct((batch, _OUT_PAD), out_dtype),
        grid=(num_tiles,),
        in_specs=[
            pl.BlockSpec((tile_batch, latent), lambda i: (i, 0)),
            # Constant index_maps -> W and b stay resident, no per-step re-DMA.
            pl.BlockSpec((latent, _OUT_PAD), lambda i: (0, 0)),
            pl.BlockSpec((1, _OUT_PAD), lambda i: (0, 0)),
        ],
        out_specs=pl.BlockSpec((tile_batch, _OUT_PAD), lambda i: (i, 0)),
        compiler_params=pltpu.CompilerParams(
            dimension_semantics=("parallel",),
            vmem_limit_bytes=int(vmem_budget),
        ),
    )(x, w_pad, b_pad)
    return logits_pad


def build_autoencoder_forward(w, b, *, tile_batch=None, out_dtype=None):
    """Pad classifier params once; return a jittable forward(x) -> (logits, x)."""
    n_classes = w.shape[1]
    w_pad, b_pad = pad_classifier_params(w, b)

    def forward(x):
        logits_pad = _classifier_pallas(x, w_pad, b_pad,
                                        tile_batch=tile_batch, out_dtype=out_dtype)
        # decoder(encoder(x)) is identity (both empty nn.Sequential): return x directly.
        return logits_pad[:, :n_classes], x

    return forward


def autoencoder_forward(x, w, b, *, tile_batch=None, out_dtype=None):
    """One-shot convenience wrapper (pads params on every call; prefer the builder)."""
    return build_autoencoder_forward(w, b, tile_batch=tile_batch,
                                     out_dtype=out_dtype)(x)


if __name__ == "__main__":
    # Small shapes consistent with the module: x is [batch, latent_size] since
    # the (identity) encoder feeds x straight into classifier = Linear(latent, 10).
    batch = 20          # deliberately not a tile multiple: exercises the ragged last block
    latent_size = 32

    key = jax.random.PRNGKey(0)
    kx, kw, kb = jax.random.split(key, 3)

    x = jax.random.normal(kx, (batch, latent_size), dtype=jnp.float32)

    # Deterministic Linear(latent_size, 10) params (PyTorch-style uniform init).
    bound = 1.0 / jnp.sqrt(jnp.float32(latent_size))
    w = jax.random.uniform(kw, (latent_size, 10), jnp.float32, -bound, bound)
    b = jax.random.uniform(kb, (10,), jnp.float32, -bound, bound)

    # Params padded once at build time; forward is jitted.
    forward = jax.jit(build_autoencoder_forward(w, b))
    logits, x_decode = forward(x)
    jax.block_until_ready((logits, x_decode))

    # Sanity check against pure-JAX reference.
    ref_logits = x @ w + b
    assert logits.shape == (batch, 10)
    assert jnp.allclose(logits, ref_logits, atol=1e-5, rtol=1e-5)
    assert x_decode.shape == x.shape
    assert jnp.array_equal(x_decode, x)

    # Reduced-writeback path: bf16 logits (halves the output HBM bytes).
    forward_bf16 = jax.jit(build_autoencoder_forward(w, b, out_dtype=jnp.bfloat16))
    logits_bf16, _ = forward_bf16(x)
    jax.block_until_ready(logits_bf16)
    assert logits_bf16.dtype == jnp.bfloat16
    assert jnp.allclose(logits_bf16.astype(jnp.float32), ref_logits,
                        atol=3e-2, rtol=3e-2)

    print("KERNEL_OK")
</pallas_src>

<mosaic_0001>
module attributes {stable_mosaic.version = 11 : i64} {
  func.func @_classifier_kernel(%arg0: i32, %arg1: memref<16x32xf32, #tpu.memory_space<vmem>>, %arg2: memref<32x128xf32, #tpu.memory_space<vmem>>, %arg3: memref<1x128xf32, #tpu.memory_space<vmem>>, %arg4: memref<16x128xf32, #tpu.memory_space<vmem>>) attributes {dimension_semantics = [#tpu.dimension_semantics<parallel>], iteration_bounds = array<i64: 2>, scalar_prefetch = 0 : i64, scratch_operands = 0 : i64, tpu.core_type = #tpu.core_type<tc>, window_params = [{transform_indices = @transform_0, window_bounds = array<i64: 16, 32>}, {pipeline_mode = #tpu.pipeline_mode<synchronous>, transform_indices = @transform_1, window_bounds = array<i64: 32, 128>}, {pipeline_mode = #tpu.pipeline_mode<synchronous>, transform_indices = @transform_2, window_bounds = array<i64: 1, 128>}, {transform_indices = @transform_3, window_bounds = array<i64: 16, 128>}]} {
    %c0 = arith.constant 0 : index
    %c0_0 = arith.constant 0 : index
    %0 = vector.load %arg1[%c0, %c0_0] : memref<16x32xf32, #tpu.memory_space<vmem>>, vector<16x32xf32>
    %c0_1 = arith.constant 0 : index
    %c0_2 = arith.constant 0 : index
    %1 = vector.load %arg2[%c0_1, %c0_2] : memref<32x128xf32, #tpu.memory_space<vmem>>, vector<32x128xf32>
    %cst = arith.constant dense<0.000000e+00> : vector<16x128xf32>
    %2 = tpu.matmul %0, %1, %cst {dimension_numbers = #tpu.dot_dimension_numbers<[1], [0], [0], [1], [0, 0, 1, 1], [], []>} : vector<16x32xf32>, vector<32x128xf32>, vector<16x128xf32> -> vector<16x128xf32>
    %c0_3 = arith.constant 0 : index
    %c0_4 = arith.constant 0 : index
    %3 = vector.load %arg3[%c0_3, %c0_4] : memref<1x128xf32, #tpu.memory_space<vmem>>, vector<1x128xf32>
    %4 = vector.broadcast %3 : vector<1x128xf32> to vector<16x128xf32>
    %5 = arith.addf %2, %4 : vector<16x128xf32>
    %c0_5 = arith.constant 0 : index
    %c0_6 = arith.constant 0 : index
    %6 = vector.load %arg4[%c0_5, %c0_6] : memref<16x128xf32, #tpu.memory_space<vmem>>, vector<16x128xf32>
    tpu.vector_store %arg4[%c0_5, %c0_6], %5 {strides = array<i32>} : memref<16x128xf32, #tpu.memory_space<vmem>>, vector<16x128xf32>,
    return
  }
  func.func @transform_0(%arg0: i32) -> (i32, i32) {
    %c0_i32 = arith.constant 0 : i32
    %c0_i32_0 = arith.constant 0 : i32
    return %arg0, %c0_i32 : i32, i32
  }
  func.func @transform_1(%arg0: i32) -> (i32, i32) {
    %c0_i32 = arith.constant 0 : i32
    %c0_i32_0 = arith.constant 0 : i32
    %c0_i32_1 = arith.constant 0 : i32
    return %c0_i32, %c0_i32_0 : i32, i32
  }
  func.func @transform_2(%arg0: i32) -> (i32, i32) {
    %c0_i32 = arith.constant 0 : i32
    %c0_i32_0 = arith.constant 0 : i32
    %c0_i32_1 = arith.constant 0 : i32
    return %c0_i32, %c0_i32_0 : i32, i32
  }
  func.func @transform_3(%arg0: i32) -> (i32, i32) {
    %c0_i32 = arith.constant 0 : i32
    %c0_i32_0 = arith.constant 0 : i32
    return %arg0, %c0_i32 : i32, i32
  }
}

</mosaic_0001>

<bundles_post_ra>
// kernel: forward.1
= control target key start
LH: loop header
LB: loop body
LE: loop exit
PB: predicated region body
PF: predicated region fallthrough
CT: control target
= control target key end

     0   :  { %8 = vsyncpa [#allocation3], 0  ;;  %s1102_s0 = inlined_call_operand.hbm [shape: f32[20,32], index: 0, kind: input, shape index: {}]   ;;  %s1103_s1 = inlined_call_operand.hbm [shape: f32[32,128], index: 1, kind: input, shape index: {}]   ;;  %s1104_s2 = inlined_call_operand.vmem [shape: f32[1,128], index: 2, kind: input, shape index: {}]   ;;  %s1105_s3 = inlined_call_operand.vmem [shape: f32[20,128], index: 3, kind: output, shape index: {}]  }
   0x1   :  { %10 = vsyncpa [#allocation3 + $0x1], 0 }
   0x2   :  { %11 = vsyncpa [#allocation5], 0  ;;  %s915_s12 = smov 0   ;;  %s917_s13 = smov 0  }
   0x3   :  { %s919_s14 = smov 0   ;;  %s921_s15 = smov 0  }
   0x4 LB: > { %s934_s16 = sadd.s32 4294967295, %s855_s15   ;;  %s937_s17 = sadd.s32 1, %s855_s15   ;;  %s855_s15 = sphi %s921_s15, %s1123_s15   ;;  %s851_s14 = sphi %s919_s14, %s1122_s14   ;;  %s847_s13 = sphi %s917_s13, %s1121_s13   ;;  %s843_s12 = sphi %s915_s12, %s1120_s12  }
   0x5   : > { %s21_s18 = ssub.s32 %s855_s15, %s937_s17  ;;  %s24_s19 = sadd.s32 1, %s851_s14 }
   0x6   : > { %p22_p0 = scmp.eq.s32.totalorder %s21_s18, 0  ;;  %p31_p1 = scmp.ne.s32.totalorder %s851_s14, %s847_s13 }
   0x7   : > { %p32_p2 = scmp.eq.s32.totalorder %s855_s15, 0  ;;  %p37_p3 = scmp.ne.s32.totalorder %s847_s13, %s843_s12 }
   0x8   : > { %s947_s20 = scalar_select %p22_p0, %s851_s14, %s24_s19  }
   0x9   : > { %p949_p4 = por %p32_p2, %p31_p1  ;;  %p1106_p5 = scmp.eq.s32.totalorder %s934_s16, 0 }
   0xa   : > { %p103_p6 = scmp.eq.s32.totalorder %s934_s16, 1  ;;  %p554_p7 = scmp.ge.s32.totalorder %s855_s15, 1 }
   0xb   : > { %s1109_s21 = scalar_select %p949_p4, 1, 0 }
   0xc   : > { %p958_p8 = por %p1106_p5, %p37_p3  ;;  %p116_p9 = scmp.lt.s32.totalorder %s855_s15, 3 }
   0xd   : > { %p963_p10 = por %p103_p6, %p31_p1  ;;  %s889_s25 = smov [#allocation4]  }
   0xe   : > { %s1110_s22 = scalar_select %p958_p8, 1, 0 }
   0xf   : > { %s1111_s23 = scalar_select %p963_p10, 1, 0 }
  0x10   : > { %p967_p11 = pnand %p554_p7, %p116_p9  ;;  %s128_s26 = sshll.u32 %s889_s25, 4  ;;  %s129_s26 = int_to_ptr.vmem [resolvable:$true] %s128_s26 }
  0x11   : > { %s729_s30 = scalar_lea.hbm %s1103_s1, 512 }
  0x12   : > { %s1112_s24 = scalar_select %p967_p11, 1, 0 }
  0x13   : > { %p622_p12 = pneg %p967_p11  ;;  %p730_p0 = scmp.ne.s32.totalorder %s1103_s1, %s729_s30 }
  0x14   : > { %p736_p6 = scmp.lt.u32.totalorder %s729_s30, %s1103_s1 }
  0x15   : > { %p975_p13 = pnand %p622_p12, %p1106_p5 }
  0x17   : > { %p731_p1 = pneg %p975_p13 }
  0x19   : > { %p732_p2 = pnand %p731_p1, %p730_p0 }
  0x1b   : > { %p733_p3 = pneg %p732_p2 }
  0x1d   : > { %p738_p7 = pnand %p736_p6, %p733_p3 }
  0x1f   : > { %741 = shalt.err (!%p738_p7)
}
  0x20   : > { %s742_s8 = scalar_lea.vmem %s129_s26, 512  ;;  %p750_p10 = scmp.lt.s32.totalorder %s129_s26, %s129_s26 }
  0x21   : > { %p743_p9 = scmp.ne.s32.totalorder %s129_s26, %s742_s8  ;;  %p751_p8 = scmp.lt.s32.totalorder %s742_s8, %s742_s8 }
  0x23   : > { %p745_p12 = pnand %p743_p9, %p731_p1  ;;  %p752_p11 = por %p751_p8, %p750_p10 }
  0x25   : > { %p746_p5 = pneg %p745_p12 }
  0x27   : > { %p753_p4 = pnand %p752_p11, %p746_p5 }
  0x29   : > { %756 = shalt.err (!%p753_p4)
}
  0x2a   : > { %s890_s9 = smov 128   ;;  %s891_s10 = smov 8  }
  0x2b   : > { %625 = dma.hbm_to_vmem [thread:$0]  (!%p975_p13), %s1103_s1, 512, %s129_s26, [#allocation5], %s890_s9, %s890_s9, %s891_s10  }
  0x2c   : > { %p556_p0 = scmp.ge.s32.totalorder %s855_s15, 2 }
  0x2d   : > { %p1114_p2 = scmp.ne.s32.totalorder (!%p556_p0), %s1109_s21, 0 }
  0x2e   : > { %141 = sbr.rel (%p556_p0) target bundleno = 88 (0x58), region = 24 }
  0x35   : > { %144 = sbr.rel (!%p1114_p2) target bundleno = 88 (0x58), region = 28  ;;  %s145_s18 = sand.u32 (%p1114_p2), 1, %s851_s14  }
  0x36   : > { %s558_s19 = sshll.u32 (%p1114_p2), %s855_s15, 1  ;;  %s557_s25 = sshll.u32 (%p1114_p2), %s145_s18, 4 }
  0x37   : > { %s151_s28 = ssub.s32 (%p1114_p2), 3, %s558_s19  ;;  %s1003_s30 = scalar_lea.sflag (%p1114_p2), [#allocation3], %s145_s18 }
  0x38   : > { %p152_p4 = scmp.lt.s32.totalorder (%p1114_p2), %s151_s28, 2  ;;  %s149_s26 = scalar_lea.vmem (%p1114_p2), [#allocation2], %s557_s25 }
  0x3c   : > { %s1125_s28 = smov (!%p152_p4, %s151_s28), 2 }
  0x3d   : > { %s1000_s29 = sshll.u32 %s1125_s28, 7 }
  0x3e   : > { %s156_s27 = ssub.s32 256, %s1000_s29 }
  0x3f   : > { %157 = vsyncadd %s1003_s30, %s156_s27  ;;  %p560_p5 = scmp.ne.s32.totalorder %s1000_s29, 0  ;;  %s588_s21 = sshll.u32 %s855_s15, 8 }
  0x40   : > { %s1011_s6 = scalar_lea.hbm %s1102_s0, %s588_s21  ;;  %s162_s7 = sshll.u32 %s149_s26, 4  ;;  %s1013_s7 = int_to_ptr.vmem [resolvable:$true] %s162_s7 }
  0x41   : > { %s757_s8 = scalar_lea.hbm %s1011_s6, %s1000_s29  ;;  %s761_s15 = scalar_lea.hbm %s1102_s0, 384 }
  0x42   : > { %p758_p8 = scmp.ne.s32.totalorder %s1011_s6, %s757_s8  ;;  %p762_p13 = scmp.lt.u32.totalorder %s1011_s6, %s1102_s0 }
  0x43   : > { %p763_p1 = scmp.lt.u32.totalorder %s761_s15, %s757_s8  ;;  %p765_p6 = scmp.lt.u32.totalorder %s757_s8, %s1011_s6 }
  0x44   : > { %p759_p10 = pnand %p758_p8, %p560_p5 }
  0x45   : > { %p764_p3 = por %p763_p1, %p762_p13 }
  0x46   : > { %p760_p11 = pneg %p759_p10 }
  0x47   : > { %p766_p7 = por %p765_p6, %p764_p3 }
  0x49   : > { %p767_p9 = pnand %p766_p7, %p760_p11 }
  0x4b   : > { %770 = shalt.err (!%p767_p9)
}
  0x4c   : > { %s771_s18 = scalar_lea.vmem %s1013_s7, %s1000_s29  ;;  %s892_s19 = smov [#allocation2]  }
  0x4d   : > { %p772_p12 = scmp.ne.s32.totalorder %s1013_s7, %s771_s18  ;;  %s775_s25 = sshll.u32 %s892_s19, 4  ;;  %s776_s25 = int_to_ptr.vmem [resolvable:$false] %s775_s25 }
  0x4e   : > { %s777_s28 = scalar_lea.vmem %s776_s25, 512  ;;  %p778_p4 = scmp.lt.s32.totalorder %s1013_s7, %s776_s25 }
  0x4f   : > { %p773_p0 = pnand %p772_p12, %p560_p5  ;;  %p779_p8 = scmp.lt.s32.totalorder %s777_s28, %s771_s18 }
  0x51   : > { %p774_p2 = pneg %p773_p0  ;;  %p780_p10 = por %p779_p8, %p778_p4 }
  0x53   : > { %p781_p13 = pnand %p780_p10, %p774_p2 }
  0x55   : > { %784 = shalt.err (!%p781_p13)
}
  0x56   : > { %s893_s27 = smov 128   ;;  %s894_s26 = smov 8  }
  0x57   : > { %168 = dma.hbm_to_vmem [thread:$0]  (%p560_p5), %s1011_s6, %s1000_s29, %s1013_s7, %s1003_s30, %s893_s27, %s893_s27, %s894_s26  }
  0x58 PF: > { %p1115_p11 = scmp.ne.s32.totalorder %s1112_s24, 0 }
  0x59   : > { %s176_s21 = sand.u32 (!%p1115_p11), 1, %s847_s13   ;;  %p1116_p1 = scmp.ne.s32.totalorder (!%p1115_p11), %s1110_s22, 0 }
  0x5a   : > { %174 = sbr.rel (%p1115_p11) target bundleno = 377 (0x179), region = 32  ;;  %s565_s4 = sshll.u32 (!%p1115_p11), %s176_s21, 4 }
  0x5b   : > { %s177_s5 = scalar_lea.sflag (!%p1115_p11), [#allocation3], %s176_s21  ;;  %s180_s8 = scalar_lea.vmem (!%p1115_p11), [#allocation2], %s565_s4 }
  0x61   : > { %834 = dma.done.wait (%p1116_p1), %s177_s5, 256  }
  0x62   : > { %836 = vsyncadd (%p1116_p1), %s177_s5, 4294967040  ;;  %p1117_p3 = scmp.eq.s32.totalorder %s934_s16, 0 }
  0x64   : > { %838 = dma.done.wait (%p1117_p3), [#allocation5], 512   ;;  %p1118_p5 = pmov %p1117_p3 }
  0x65   : > { %vm229_vm0 = vcmask 261120   ;;  %v218_v0 = vld [vmem:[#allocation4] sm:$0xff]  ;;  %v219_v1 = vld [vmem:[#allocation4 + $0x8] sm:$0xff]  ;;  %v220_v2 = vld [vmem:[#allocation4 + $0x10] sm:$0xff]  ;;  %s1054_s29 = scalar_lea.vmem [#allocation6], %s565_s4   ;;  %p1119_p6 = scmp.ne.s32.totalorder %s1111_s23, 0 }
  0x66   : > { %840 = vsyncadd (%p1118_p5), [#allocation5], 4294966784  ;;  %v609_v3 = vpack.c.bf16 %v219_v1, %v218_v0  ;;  %v221_v4 = vld [vmem:[#allocation4 + $0x18] sm:$0xff]  ;;  %v216_v5 = vld [vmem:[%s180_s8] sm:$0xff]  ;;  %s572_s30 = sshll.u32 (%p1119_p6), %s934_s16, 1  ;;  %s589_s6 = sshll.u32 (%p1119_p6), %s934_s16, 4 }
  0x67   : > { %v613_v6 = vpack.c.bf16 %v221_v4, %v220_v2  ;;  %606 = vmatprep.mubr.msk.f32.mxu0 %vm229_vm0, %v216_v5  ;;  %v217_v7 = vld [vmem:[%s180_s8 + $0x8] sm:$0xff]  ;;  %v568_v8 = vld [vmem:[%s1104_s2] ss:$0 sm:$0xff]  ;;  %s321_s7 = ssub.s32 (%p1119_p6), 3, %s572_s30  ;;  %s1065_s15 = scalar_lea.vmem (%p1119_p6), %s1105_s3, %s589_s6  }
  0x68   : > { %610 = vmatprep.subr.bf16.mxu0 %v609_v3  ;;  %p322_p7 = scmp.lt.s32.totalorder (%p1119_p6), %s321_s7, 2 }
  0x69   : > { %612 = vmatpush3.bf16.msra.mxu0 %v609_v3 }
  0x6a   : > { %614 = vmatprep.subr.bf16.mxu0 %v613_v6 }
  0x6d   : > { %616 = vmatpush3.bf16.msra.mxu0 %v613_v6 }
  0x70   : > { %607 = vmatmul.mubr.msk.f32.vlgmr.msra.gmra.mrb[0].mxu0 %vm229_vm0, %v217_v7 }
 0x141   : > { %319 = sbr.rel (!%p1119_p6) target bundleno = 377 (0x179), region = 44 }
 0x143   : > { %v608_v9 = vpop.f32.mrb[0].mxu0 }
 0x144   : > { %v308_v10 = vadd.f32 %v608_v9, %v568_v8  ;;  %v302_v11 = vpop.f32.mrb[1].mxu0 }
 0x145   : > { %v303_v12 = vadd.f32 %v568_v8, %v302_v11 }
 0x146   : > { %312 = vst [vmem:[%s1054_s29 + $0x8] sm:$0xff] %v308_v10 }
 0x147   : > { %311 = vst [vmem:[%s1054_s29] sm:$0xff] %v303_v12 }
 0x148   : > { %s1127_s7 = smov (!%p322_p7, %s321_s7), 2 }
 0x149   : > { %s573_s11 = sshll.u32 %s1127_s7, 7 }
 0x14a   : > { %p576_p9 = scmp.eq.s32.totalorder %s573_s11, 0 }
 0x14b   : > { %s1071_s23 = sshrl.u32 (!%p576_p9), %s1127_s7, 1 }
 0x14c   : > { %330 = sbr.rel (%p576_p9) target bundleno = 377 (0x179), region = 48  ;;  %p577_p12 = scmp.le.s32.totalorder (!%p576_p9), %s1071_s23, 0 }
 0x153   : > { %497 = sbr.rel (%p577_p12) target bundleno = 356 (0x164), region = 130  ;;  %s857_s16 = smov (!%p577_p12), %s1065_s15  }
 0x154   : > { %s861_s12 = smov (!%p577_p12), %s1054_s29   ;;  %s865_s18 = smov (!%p577_p12), 0  }
 0x155   : > { %s869_s19 = smov (!%p577_p12), 0  }
 0x15a LB: >> { %v394_v13 = vld [vmem:[%s863_s12] sm:$0xff]  ;;  %v396_v14 = vld [vmem:[%s863_s12 + $0x8] sm:$0xff]  ;;  %s398_s25 = sadd.s32 1, %s867_s18  ;;  %s388_s19 = sadd.s32 1, %s871_s19   ;;  %s871_s19 = sphi %s869_s19, %s388_s19   ;;  %s867_s18 = sphi %s865_s18, %s866_s18   ;;  %s863_s12 = sphi %s861_s12, %s403_s12   ;;  %s859_s16 = sphi %s857_s16, %s404_s16  }
 0x15b   : >> { %395 = vst [vmem:[%s859_s16] sm:$0xff] %v394_v13  ;;  %397 = vst [vmem:[%s859_s16 + $0x8] sm:$0xff] %v396_v14  ;;  %p399_p0 = scmp.ge.s32.totalorder %s398_s25, %s1071_s23  ;;  %p387_p2 = scmp.ge.s32.totalorder %s388_s19, %s1071_s23 }
 0x15d   : >> { %s1129_s25 = smov (%p399_p0, %s398_s25), 0  ;;  %390 = sbr.rel (!%p387_p2) target bundleno = 346 (0x15a), region = 136 }
 0x15e   : >> { %s578_s28 = sshll.u32 %s1129_s25, 4  ;;  %s866_s18 = smov %s1129_s25  }
 0x15f   : >> { %s403_s12 = scalar_lea.vmem %s1054_s29, %s578_s28 [#allocation6]   ;;  %s404_s16 = scalar_lea.vmem %s1065_s15, %s578_s28  }
 0x164 PF: > { %s1081_s27 = sand.u32 1, %s1127_s7   ;;  %s590_s26 = sshll.u32 %s1071_s23, 4 }
 0x165   : > { %s409_s21 = scalar_lea.vmem %s1054_s29, %s590_s26 [#allocation6]   ;;  %s411_s4 = scalar_lea.vmem %s1065_s15, %s590_s26  }
 0x166   : > { %p583_p4 = scmp.le.s32.totalorder %s1081_s27, 0 }
 0x167   : > { %s873_s5 = smov (!%p583_p4), %s411_s4   ;;  %s877_s8 = smov (!%p583_p4), %s409_s21  }
 0x168   : > { %511 = sbr.rel (%p583_p4) target bundleno = 377 (0x179), region = 141  ;;  %s881_s22 = smov (!%p583_p4), 0  }
 0x169   : > { %s885_s24 = smov (!%p583_p4), 0  }
 0x16f LB: >> { %v421_v15 = vld [vmem:[%s879_s8] sm:$0xff]  ;;  %s423_s30 = sadd.s32 1, %s883_s22  ;;  %s415_s24 = sadd.s32 1, %s887_s24   ;;  %s887_s24 = sphi %s885_s24, %s415_s24   ;;  %s883_s22 = sphi %s881_s22, %s882_s22   ;;  %s879_s8 = sphi %s877_s8, %s428_s8   ;;  %s875_s5 = sphi %s873_s5, %s429_s5  }
 0x170   : >> { %422 = vst [vmem:[%s875_s5] sm:$0xff] %v421_v15  ;;  %p424_p8 = scmp.ge.s32.totalorder %s423_s30, %s1081_s27  ;;  %p414_p10 = scmp.ge.s32.totalorder %s415_s24, %s1081_s27 }
 0x172   : >> { %s1131_s30 = smov (%p424_p8, %s423_s30), 0  ;;  %417 = sbr.rel (!%p414_p10) target bundleno = 367 (0x16f), region = 147 }
 0x173   : >> { %s584_s29 = sshll.u32 %s1131_s30, 3  ;;  %s882_s22 = smov %s1131_s30  }
 0x174   : >> { %s428_s8 = scalar_lea.vmem %s409_s21, %s584_s29 [#allocation6]   ;;  %s429_s5 = scalar_lea.vmem %s411_s4, %s584_s29  }
 0x179 PF: > { %p14_p13 = scmp.ge.s32.totalorder %s937_s17, 4   ;;  %s1120_s12 = smov %s847_s13 }
 0x17a   : > { %s1121_s13 = smov %s851_s14  ;;  %s1122_s14 = smov %s947_s20 }
 0x17b   : > { %s1123_s15 = smov %s937_s17  ;;  %16 = sbr.rel (!%p14_p13) target bundleno = 4 (0x4), region = 158 }
 0x182   :  { %445 = vsyncpa [#allocation3], 1 }
 0x183   :  { %447 = vsyncpa [#allocation3 + $0x1], 1 }
 0x184   :  { %448 = vsyncpa [#allocation5], 1 }

</bundles_post_ra>
